<compile_context>
chip_gen: v7x
topology: tpu7x:2x2x1
jax: 0.10.0
libtpu: 0.0.40
codegen_flags: <defaults>
</compile_context>

<pallas_src>
import functools

import jax
import jax.numpy as jnp
from jax.experimental import pallas as pl
from jax.experimental.pallas import tpu as pltpu


_VMEM_LIMIT = 32 * 1024 * 1024      # scoped-VMEM ceiling requested (safe on v5e/v6e/v7x)
_FUSED_X_BYTES = 2 << 20            # single-read fused kernel when x fits comfortably in VMEM
_TARGET_BLOCK_BYTES = 2 << 20       # ~2 MiB input blocks: above the ~85% roofline knee


# --------------------------------- kernels ---------------------------------

def _fused_kernel(x_ref, wg_ref, wb_ref, o_ref, *, eps, inv_n):
    """x fully resident in VMEM: batch stats + gating in ONE HBM read of x."""
    x = x_ref[...].astype(jnp.float32)                    # [B, C, L]
    s = jnp.sum(x, axis=2, keepdims=True)                 # [B, C, 1]  (lane reduce)
    q = jnp.sum(x * x, axis=2, keepdims=True)
    s = jnp.sum(s, axis=0, keepdims=True)                 # [1, C, 1]
    q = jnp.sum(q, axis=0, keepdims=True)
    mean = s * inv_n
    var = q * inv_n - mean * mean                         # biased var (BN normalization)
    inv_std = jax.lax.rsqrt(var + eps)
    ah = 0.5 * wg_ref[...] * inv_std                      # 0.5 * w_bn*gamma/std
    bh = 0.5 * wb_ref[...] - ah * mean                    # 0.5 * (w_bn*beta - a*mean)
    gate = 0.5 * jnp.tanh(x * ah + bh) + 0.5              # == sigmoid(a*x + b), 1 EUP op
    o_ref[...] = (gate * x).astype(o_ref.dtype)


def _stats_kernel(x_ref, sum_ref, sq_ref):
    """Per-row (= per (batch, channel)) sum and sum-of-squares in one pass over x.
    Lane-tile axis (j) is the reduction axis: outputs are accumulators across it."""
    j = pl.program_id(1)

    @pl.when(j == 0)
    def _():
        sum_ref[...] = jnp.zeros_like(sum_ref)
        sq_ref[...] = jnp.zeros_like(sq_ref)

    x = x_ref[...].astype(jnp.float32)                    # [tm, tl]
    sum_ref[...] += jnp.sum(x, axis=-1, keepdims=True)
    sq_ref[...] += jnp.sum(x * x, axis=-1, keepdims=True)


def _gate_kernel(x_ref, ab_ref, o_ref):
    """out = sigmoid(a*x + b) * x with per-row constants (tanh form, 1 EUP op/elem).
    Tail blocks (M % tm != 0 / L % tl != 0) run tanh on padded garbage rows/lanes;
    benign: TPU has no FP traps and the partial store is masked to the valid region."""
    x = x_ref[...].astype(jnp.float32)                    # [tm, tl]
    ah = ab_ref[0]                                        # [tm, 1]  (0.5*a per row)
    bh = ab_ref[1]                                        # [tm, 1]  (0.5*b per row)
    gate = 0.5 * jnp.tanh(x * ah + bh) + 0.5
    o_ref[...] = (gate * x).astype(o_ref.dtype)
    # TODO(synk): for bf16 inputs on v6e/v7x the gate could stay in bf16 (bf16 VPU/EUP)
    # to halve VMEM traffic; kept f32 here so the same kernel is valid on v5e.


# ------------------------------ tiling helpers ------------------------------

def _num_tensorcores():
    """2 on v7x-class chips (grid 'parallel' axes are sharded over both TCs), else 1.
    Purely a perf heuristic; default to 1 on any doubt."""
    try:
        kind = jax.devices()[0].device_kind.lower()
        return 2 if ("v7" in kind or "7x" in kind) else 1
    except Exception:
        return 1


def _pick_tiles(M, L, itemsize, two_tc):
    """Row/lane tiles for the [M, L] view: ~2 MiB blocks, dtype-aware sublane multiple,
    lane tiling only when a minimal block would blow scoped VMEM, even row-step count
    on 2-TC chips, and NO forced splitting on single-TC chips."""
    sub = max(8, 32 // itemsize)                          # 8 f32 / 16 bf16 / 32 int8
    if L % 128 == 0 and sub * L * itemsize > _TARGET_BLOCK_BYTES:
        tl = max(128, (_TARGET_BLOCK_BYTES // (sub * itemsize)) // 128 * 128)
        while tl > 128 and L % tl:                        # exact divisor keeps stats exact
            tl -= 128
        if L % tl:
            tl = L
    else:
        tl = L   # TODO(synk): pathological huge L not divisible by 128 stays untiled
    cap = max(sub, (_TARGET_BLOCK_BYTES // max(1, tl * itemsize)) // sub * sub)
    tm = M if cap >= M else cap                           # single big block when it fits
    if two_tc and M > sub:                                # v7x: balance the two TCs
        steps = -(-M // tm)
        if steps % 2:
            tgt = -(-M // (steps + 1))
            cand = max(sub, min(-(-tgt // sub) * sub, M))
            if (-(-M // cand)) % 2 == 0:
                tm = cand
    return tm, tl


# -------------------------------- JAX wrapper --------------------------------

def channel_att_forward(x, gamma, beta, running_mean=None, running_var=None,
                        eps=1e-5, use_batch_stats=True, force_two_pass=False):
    """Forward of Channel_Att.  x: NCHW.
    use_batch_stats=True  -> BN training-mode normalization (per-channel batch stats),
                             which is what the PyTorch module computes in train().
    use_batch_stats=False -> eval mode using running_mean / running_var."""
    B, C, H, W = x.shape
    L, M = H * W, B * C
    nbytes = x.size * x.dtype.itemsize

    g32 = gamma.astype(jnp.float32)
    w_abs = jnp.abs(g32)
    weight_bn = w_abs / jnp.sum(w_abs)                    # |gamma| / sum|gamma|
    wg = weight_bn * g32                                  # [C]
    wb = weight_bn * beta.astype(jnp.float32)             # [C]

    # ---- path 1: x fits in VMEM -> single fused kernel, x read exactly once ----
    if use_batch_stats and not force_two_pass and nbytes <= _FUSED_X_BYTES:
        x3 = x.reshape(B, C, L)
        out = pl.pallas_call(
            functools.partial(_fused_kernel, eps=float(eps), inv_n=1.0 / float(B * L)),
            out_shape=jax.ShapeDtypeStruct((B, C, L), x.dtype),
            grid_spec=pltpu.PrefetchScalarGridSpec(
                num_scalar_prefetch=0,
                grid=(1,),
                in_specs=[pl.BlockSpec((B, C, L), lambda i: (0, 0, 0)),
                          pl.BlockSpec((1, C, 1), lambda i: (0, 0, 0)),
                          pl.BlockSpec((1, C, 1), lambda i: (0, 0, 0))],
                out_specs=pl.BlockSpec((B, C, L), lambda i: (0, 0, 0))),
            compiler_params=pltpu.CompilerParams(
                dimension_semantics=("arbitrary",),
                vmem_limit_bytes=_VMEM_LIMIT),
            cost_estimate=pl.CostEstimate(flops=9 * x.size, transcendentals=x.size,
                                          bytes_accessed=2 * nbytes),
        )(x3, wg.reshape(1, C, 1), wb.reshape(1, C, 1))
        return out.reshape(B, C, H, W)

    # ---- path 2: tiled; optional single-pass Pallas stats kernel, then gating ----
    x2 = x.reshape(M, L)                                  # NCHW-native; lane dim = H*W
    tm, tl = _pick_tiles(M, L, x.dtype.itemsize, _num_tensorcores() >= 2)
    grid = (pl.cdiv(M, tm), pl.cdiv(L, tl))

    if use_batch_stats:
        sums, sqs = pl.pallas_call(
            _stats_kernel,
            out_shape=(jax.ShapeDtypeStruct((M, 1), jnp.float32),
                       jax.ShapeDtypeStruct((M, 1), jnp.float32)),
            grid_spec=pltpu.PrefetchScalarGridSpec(
                num_scalar_prefetch=0,
                grid=grid,
                in_specs=[pl.BlockSpec((tm, tl), lambda i, j: (i, j))],
                out_specs=(pl.BlockSpec((tm, 1), lambda i, j: (i, 0)),
                           pl.BlockSpec((tm, 1), lambda i, j: (i, 0)))),
            compiler_params=pltpu.CompilerParams(
                dimension_semantics=("parallel", "arbitrary"),
                vmem_limit_bytes=_VMEM_LIMIT),
            cost_estimate=pl.CostEstimate(flops=3 * x.size, transcendentals=0,
                                          bytes_accessed=nbytes + 8 * M),
        )(x2)
        n = float(B * L)
        mean = jnp.sum(sums.reshape(B, C), axis=0) / n    # O(C) constant fold
        var = jnp.sum(sqs.reshape(B, C), axis=0) / n - mean * mean
    else:
        mean = running_mean.astype(jnp.float32)
        var = running_var.astype(jnp.float32)

    inv_std = jax.lax.rsqrt(var + eps)
    ah = 0.5 * wg * inv_std                               # 0.5 folded in -> one tanh/elem
    bh = 0.5 * wb - ah * mean
    # Per-row constants merged into ONE (2, M, 1) side input (single DMA stream).
    ab = jnp.stack([jnp.tile(ah, B), jnp.tile(bh, B)]).reshape(2, M, 1)

    out = pl.pallas_call(
        _gate_kernel,
        out_shape=jax.ShapeDtypeStruct((M, L), x.dtype),
        grid_spec=pltpu.PrefetchScalarGridSpec(
            num_scalar_prefetch=0,
            grid=grid,
            in_specs=[pl.BlockSpec((tm, tl), lambda i, j: (i, j)),
                      pl.BlockSpec((2, tm, 1), lambda i, j: (0, i, 0))],
            out_specs=pl.BlockSpec((tm, tl), lambda i, j: (i, j))),
        compiler_params=pltpu.CompilerParams(
            dimension_semantics=("parallel", "parallel"),
            vmem_limit_bytes=_VMEM_LIMIT),
        cost_estimate=pl.CostEstimate(flops=5 * x.size, transcendentals=x.size,
                                      bytes_accessed=2 * nbytes + 8 * M),
    )(x2, ab)
    return out.reshape(B, C, H, W)


# --------------------------- pure-JAX reference (check) ---------------------------

def channel_att_reference(x, gamma, beta, eps=1e-5):
    xf = x.astype(jnp.float32)
    mean = jnp.mean(xf, axis=(0, 2, 3))
    var = jnp.var(xf, axis=(0, 2, 3))
    inv = jax.lax.rsqrt(var + eps)
    xn = (xf - mean[None, :, None, None]) * inv[None, :, None, None]
    xn = xn * gamma[None, :, None, None] + beta[None, :, None, None]
    weight_bn = jnp.abs(gamma) / jnp.sum(jnp.abs(gamma))
    return jax.nn.sigmoid(xn * weight_bn[None, :, None, None]) * xf


# ------------------------------------ main ------------------------------------

if __name__ == "__main__":
    B, C, H, W = 2, 4, 16, 16
    key = jax.random.PRNGKey(0)
    kx, kg, kb = jax.random.split(key, 3)
    x = jax.random.normal(kx, (B, C, H, W), dtype=jnp.float32)
    gamma = 1.0 + 0.1 * jax.random.normal(kg, (C,), dtype=jnp.float32)
    beta = 0.1 * jax.random.normal(kb, (C,), dtype=jnp.float32)

    ref = channel_att_reference(x, gamma, beta)

    # 1) fused single-HBM-read path (x resident in VMEM)
    out = jax.jit(channel_att_forward)(x, gamma, beta)
    jax.block_until_ready(out)
    assert out.shape == (B, C, H, W) and out.dtype == jnp.float32
    err = float(jnp.max(jnp.abs(out - ref)))
    assert err < 2e-4, f"fused path max abs error {err}"

    # 2) general tiled path (Pallas stats pass + gating pass), forced for coverage
    out2 = jax.jit(functools.partial(channel_att_forward, force_two_pass=True))(x, gamma, beta)
    jax.block_until_ready(out2)
    err2 = float(jnp.max(jnp.abs(out2 - ref)))
    assert err2 < 2e-4, f"two-pass path max abs error {err2}"

    # 3) eval-mode path (running stats -> gating kernel only)
    rm = jnp.mean(x, axis=(0, 2, 3))
    rv = jnp.var(x, axis=(0, 2, 3))
    out3 = jax.jit(functools.partial(channel_att_forward, use_batch_stats=False))(
        x, gamma, beta, rm, rv)
    jax.block_until_ready(out3)
    err3 = float(jnp.max(jnp.abs(out3 - ref)))
    assert err3 < 2e-4, f"eval path max abs error {err3}"

    print("KERNEL_OK")
</pallas_src>

<mosaic_0001>
module attributes {stable_mosaic.version = 11 : i64} {
  func.func @_fused_kernel(%arg0: i32, %arg1: memref<2x4x256xf32, #tpu.memory_space<vmem>>, %arg2: memref<1x4x1xf32, #tpu.memory_space<vmem>>, %arg3: memref<1x4x1xf32, #tpu.memory_space<vmem>>, %arg4: memref<2x4x256xf32, #tpu.memory_space<vmem>>) attributes {dimension_semantics = [#tpu.dimension_semantics<arbitrary>], iteration_bounds = array<i64: 1>, scalar_prefetch = 0 : i64, scratch_operands = 0 : i64, tpu.core_type = #tpu.core_type<tc>, window_params = [{pipeline_mode = #tpu.pipeline_mode<synchronous>, transform_indices = @transform_0, window_bounds = array<i64: 2, 4, 256>}, {pipeline_mode = #tpu.pipeline_mode<synchronous>, transform_indices = @transform_1, window_bounds = array<i64: 1, 4, 1>}, {pipeline_mode = #tpu.pipeline_mode<synchronous>, transform_indices = @transform_2, window_bounds = array<i64: 1, 4, 1>}, {pipeline_mode = #tpu.pipeline_mode<synchronous>, transform_indices = @transform_3, window_bounds = array<i64: 2, 4, 256>}]} {
    %c0 = arith.constant 0 : index
    %c0_0 = arith.constant 0 : index
    %c0_1 = arith.constant 0 : index
    %0 = vector.load %arg1[%c0, %c0_0, %c0_1] : memref<2x4x256xf32, #tpu.memory_space<vmem>>, vector<2x4x256xf32>
    %cst = arith.constant dense<0.000000e+00> : vector<2x4xf32>
    %1 = vector.multi_reduction <add>, %0, %cst [2] : vector<2x4x256xf32> to vector<2x4xf32>
    %2 = vector.shape_cast %1 : vector<2x4xf32> to vector<2x4x1xf32>
    %3 = arith.mulf %0, %0 : vector<2x4x256xf32>
    %cst_2 = arith.constant dense<0.000000e+00> : vector<2x4xf32>
    %4 = vector.multi_reduction <add>, %3, %cst_2 [2] : vector<2x4x256xf32> to vector<2x4xf32>
    %5 = vector.shape_cast %4 : vector<2x4xf32> to vector<2x4x1xf32>
    %cst_3 = arith.constant dense<0.000000e+00> : vector<4x1xf32>
    %6 = vector.multi_reduction <add>, %2, %cst_3 [0] : vector<2x4x1xf32> to vector<4x1xf32>
    %7 = vector.shape_cast %6 : vector<4x1xf32> to vector<1x4x1xf32>
    %cst_4 = arith.constant dense<0.000000e+00> : vector<4x1xf32>
    %8 = vector.multi_reduction <add>, %5, %cst_4 [0] : vector<2x4x1xf32> to vector<4x1xf32>
    %9 = vector.shape_cast %8 : vector<4x1xf32> to vector<1x4x1xf32>
    %cst_5 = arith.constant 0.001953125 : f32
    %10 = vector.broadcast %cst_5 : f32 to vector<1x4x1xf32>
    %11 = arith.mulf %7, %10 : vector<1x4x1xf32>
    %cst_6 = arith.constant 0.001953125 : f32
    %12 = vector.broadcast %cst_6 : f32 to vector<1x4x1xf32>
    %13 = arith.mulf %9, %12 : vector<1x4x1xf32>
    %14 = arith.mulf %11, %11 : vector<1x4x1xf32>
    %15 = arith.subf %13, %14 : vector<1x4x1xf32>
    %cst_7 = arith.constant 9.99999974E-6 : f32
    %16 = vector.broadcast %cst_7 : f32 to vector<1x4x1xf32>
    %17 = arith.addf %15, %16 : vector<1x4x1xf32>
    %18 = math.rsqrt %17 : vector<1x4x1xf32>
    %c0_8 = arith.constant 0 : index
    %c0_9 = arith.constant 0 : index
    %c0_10 = arith.constant 0 : index
    %19 = vector.load %arg2[%c0_8, %c0_9, %c0_10] : memref<1x4x1xf32, #tpu.memory_space<vmem>>, vector<1x4x1xf32>
    %cst_11 = arith.constant 5.000000e-01 : f32
    %20 = vector.broadcast %cst_11 : f32 to vector<1x4x1xf32>
    %21 = arith.mulf %20, %19 : vector<1x4x1xf32>
    %22 = arith.mulf %21, %18 : vector<1x4x1xf32>
    %c0_12 = arith.constant 0 : index
    %c0_13 = arith.constant 0 : index
    %c0_14 = arith.constant 0 : index
    %23 = vector.load %arg3[%c0_12, %c0_13, %c0_14] : memref<1x4x1xf32, #tpu.memory_space<vmem>>, vector<1x4x1xf32>
    %cst_15 = arith.constant 5.000000e-01 : f32
    %24 = vector.broadcast %cst_15 : f32 to vector<1x4x1xf32>
    %25 = arith.mulf %24, %23 : vector<1x4x1xf32>
    %26 = arith.mulf %22, %11 : vector<1x4x1xf32>
    %27 = arith.subf %25, %26 : vector<1x4x1xf32>
    %28 = vector.broadcast %22 : vector<1x4x1xf32> to vector<2x4x256xf32>
    %29 = arith.mulf %0, %28 : vector<2x4x256xf32>
    %30 = vector.broadcast %27 : vector<1x4x1xf32> to vector<2x4x256xf32>
    %31 = arith.addf %29, %30 : vector<2x4x256xf32>
    %32 = math.tanh %31 : vector<2x4x256xf32>
    %cst_16 = arith.constant 5.000000e-01 : f32
    %33 = vector.broadcast %cst_16 : f32 to vector<2x4x256xf32>
    %34 = arith.mulf %33, %32 : vector<2x4x256xf32>
    %cst_17 = arith.constant 5.000000e-01 : f32
    %35 = vector.broadcast %cst_17 : f32 to vector<2x4x256xf32>
    %36 = arith.addf %34, %35 : vector<2x4x256xf32>
    %37 = arith.mulf %36, %0 : vector<2x4x256xf32>
    %c0_18 = arith.constant 0 : index
    %c0_19 = arith.constant 0 : index
    %c0_20 = arith.constant 0 : index
    %38 = vector.load %arg4[%c0_18, %c0_19, %c0_20] : memref<2x4x256xf32, #tpu.memory_space<vmem>>, vector<2x4x256xf32>
    tpu.vector_store %arg4[%c0_18, %c0_19, %c0_20], %37 {strides = array<i32>} : memref<2x4x256xf32, #tpu.memory_space<vmem>>, vector<2x4x256xf32>,
    return
  }
  func.func @transform_0(%arg0: i32) -> (i32, i32, i32) {
    %c0_i32 = arith.constant 0 : i32
    %c0_i32_0 = arith.constant 0 : i32
    %c0_i32_1 = arith.constant 0 : i32
    %c0_i32_2 = arith.constant 0 : i32
    return %c0_i32, %c0_i32_0, %c0_i32_1 : i32, i32, i32
  }
  func.func @transform_1(%arg0: i32) -> (i32, i32, i32) {
    %c0_i32 = arith.constant 0 : i32
    %c0_i32_0 = arith.constant 0 : i32
    %c0_i32_1 = arith.constant 0 : i32
    %c0_i32_2 = arith.constant 0 : i32
    return %c0_i32, %c0_i32_0, %c0_i32_1 : i32, i32, i32
  }
  func.func @transform_2(%arg0: i32) -> (i32, i32, i32) {
    %c0_i32 = arith.constant 0 : i32
    %c0_i32_0 = arith.constant 0 : i32
    %c0_i32_1 = arith.constant 0 : i32
    %c0_i32_2 = arith.constant 0 : i32
    return %c0_i32, %c0_i32_0, %c0_i32_1 : i32, i32, i32
  }
  func.func @transform_3(%arg0: i32) -> (i32, i32, i32) {
    %c0_i32 = arith.constant 0 : i32
    %c0_i32_0 = arith.constant 0 : i32
    %c0_i32_1 = arith.constant 0 : i32
    %c0_i32_2 = arith.constant 0 : i32
    return %c0_i32, %c0_i32_0, %c0_i32_1 : i32, i32, i32
  }
}

</mosaic_0001>

<bundles_post_ra>
// kernel: channel_att_forward.1
= control target key start
LH: loop header
LB: loop body
LE: loop exit
PB: predicated region body
PF: predicated region fallthrough
CT: control target
= control target key end

     0   :  { %vm22_vm0 = vcmask 1043456   ;;  %v124_v20 = vmov 0   ;;  %v125_v44 = vmov 839922192   ;;  %v77_v46 = vlaneseq  ;;  %s194_s0 = inlined_call_operand.vmem [shape: f32[2,4,256], index: 0, kind: input, shape index: {}]   ;;  %s195_s1 = inlined_call_operand.vmem [shape: f32[1,4,1], index: 1, kind: input, shape index: {}]   ;;  %s196_s2 = inlined_call_operand.vmem [shape: f32[1,4,1], index: 2, kind: input, shape index: {}]   ;;  %s197_s3 = inlined_call_operand.vmem [shape: f32[2,4,256], index: 3, kind: output, shape index: {}]  }
   0x1   :  { %v149_v0 = vld [vmem:[%s194_s0] sm:$0xff]  ;;  %v154_v1 = vld [vmem:[%s194_s0 + $0x8] sm:$0xff]  ;;  %114 = vset.pattern.permute.xlu0 %v124_v20  ;;  %115 = vset.pattern.permute.xlu1 %v124_v20  ;;  %v75_v45 = vunpack.c.l.s4 %v125_v44 }
   0x2   :  { %v18_v2 = vcombine.high %v149_v0, %v149_v0  ;;  %v23_v3 = vsel %vm22_vm0, %v149_v0, 0.0  ;;  %v33_v4 = vmul.f32 %v149_v0, %v149_v0  ;;  %v19_v5 = vcombine.high %v154_v1, %v154_v1  ;;  %v63_v36 = vld [vmem:[%s195_s1] sm:$0xf] }
   0x3   :  { %v28_v6 = vsel %vm22_vm0, %v154_v1, 0.0  ;;  %v34_v7 = vmul.f32 %v154_v1, %v154_v1  ;;  %v64_v37 = vmul.f32 0.5, %v63_v36  ;;  %v66_v38 = vld [vmem:[%s196_s2] sm:$0xf]  ;;  %v76_v47 = vunpack.c.0.s8 %v75_v45 }
   0x4   :  { %v24_v8 = vsel %vm22_vm0, %v18_v2, 0.0  ;;  %v37_v9 = vcombine.high %v33_v4, %v33_v4  ;;  %v41_v10 = vsel %vm22_vm0, %v33_v4, 0.0  ;;  %v29_v11 = vsel %vm22_vm0, %v19_v5, 0.0 }
   0x5   :  { %v25_v12 = vadd.f32 %v24_v8, %v23_v3  ;;  %v38_v13 = vcombine.high %v34_v7, %v34_v7  ;;  %v46_v15 = vsel %vm22_vm0, %v34_v7, 0.0  ;;  %v30_v17 = vadd.f32 %v29_v11, %v28_v6 }
   0x6   :  { %v42_v14 = vsel %vm22_vm0, %v37_v9, 0.0  ;;  %v67_v41 = vmul.f32 0.5, %v66_v38  ;;  %v78_v48 = vshrl.u32 %v77_v46, 7 }
   0x7   :  { %26 = vadd.xlane.f32.xlu0 %v25_v12  ;;  %v43_v16 = vadd.f32 %v42_v14, %v41_v10  ;;  %v47_v18 = vsel %vm22_vm0, %v38_v13, 0.0 }
   0x8   :  { %v48_v19 = vadd.f32 %v47_v18, %v46_v15  ;;  %v79_v49 = vsub.s32 %v76_v47, %v78_v48 }
   0x9   :  { %44 = vadd.xlane.f32.xlu1 %v43_v16 }
   0xb   :  { %31 = vadd.xlane.f32.xlu0 %v30_v17 }
   0xd   :  { %49 = vadd.xlane.f32.xlu1 %v48_v19 }
  0x94   :  { %v27_v21 = vpop.xlane.xlu0 %26 }
  0x95   :  { %v51_v24 = vsel %vm22_vm0, %v27_v21, 0.0 }
  0x96   :  { %v45_v22 = vpop.xlane.xlu1 %44 }
  0x97   :  { %v54_v28 = vsel %vm22_vm0, %v45_v22, 0.0 }
  0x98   :  { %v32_v23 = vpop.xlane.xlu0 %31 }
  0x99   :  { %v52_v25 = vsel %vm22_vm0, %v32_v23, 0.0 }
  0x9a   :  { %v53_v26 = vadd.f32 %v52_v25, %v51_v24  ;;  %v50_v27 = vpop.xlane.xlu1 %49 }
  0x9b   :  { %v55_v29 = vsel %vm22_vm0, %v50_v27, 0.0 }
  0x9c   :  { %v57_v30 = vmul.f32 0.001953125, %v53_v26  ;;  %v56_v31 = vadd.f32 %v55_v29, %v54_v28 }
  0x9e   :  { %v59_v32 = vmul.f32 %v57_v30, %v57_v30  ;;  %v58_v33 = vmul.f32 0.001953125, %v56_v31 }
  0xa0   :  { %v60_v34 = vsub.f32 %v58_v33, %v59_v32 }
  0xa2   :  { %v61_v35 = vadd.f32 1e-05, %v60_v34 }
  0xa4   :  { %118 = vrsqrt.f32 %v61_v35 }
  0xae   :  { %v119_v39 = vpop.eup %118 }
  0xaf   :  { %v65_v40 = vmul.f32 %v119_v39, %v64_v37 }
  0xb1   :  { %72 = vperm.xlu0 %114, %v65_v40   ;;  %v68_v42 = vmul.f32 %v65_v40, %v57_v30 }
  0xb3   :  { %v69_v43 = vsub.f32 %v67_v41, %v68_v42 }
  0xb5   :  { %86 = vperm.xlu1 %115, %v69_v43  }
 0x130   :  { %v73_v50 = vpop.permute.xlu0 %72 }
 0x131   :  { %v80_v51 = vrot.slane %v73_v50, %v79_v49 }
 0x133   :  { %v82_v53 = vmul.f32 %v80_v51, %v149_v0  ;;  %v83_v54 = vmul.f32 %v80_v51, %v154_v1 }
 0x134   :  { %v87_v52 = vpop.permute.xlu1 %86 }
 0x135   :  { %v94_v55 = vrot.slane %v87_v52, %v79_v49 }
 0x137   :  { %v96_v56 = vadd.f32 %v94_v55, %v82_v53  ;;  %v97_v57 = vadd.f32 %v94_v55, %v83_v54 }
 0x139   :  { %120 = vtanh.f32 %v96_v56 }
 0x13a   :  { %122 = vtanh.f32 %v97_v57 }
 0x143   :  { %v121_v58 = vpop.eup %120 }
 0x144   :  { %v123_v59 = vpop.eup %122  ;;  %v100_v60 = vmul.f32 0.5, %v121_v58 }
 0x145   :  { %v101_v61 = vmul.f32 0.5, %v123_v59 }
 0x146   :  { %v102_v62 = vadd.f32 0.5, %v100_v60 }
 0x147   :  { %v103_v63 = vadd.f32 0.5, %v101_v61 }
 0x148   :  { %v104_v2 = vmul.f32 %v102_v62, %v149_v0 }
 0x149   :  { %v105_v3 = vmul.f32 %v103_v63, %v154_v1 }
 0x14a   :  { %106 = vst [vmem:[%s197_s3] sm:$0xff] %v104_v2 }
 0x14b   :  { %107 = vst [vmem:[%s197_s3 + $0x8] sm:$0xff] %v105_v3 }

</bundles_post_ra>
